<compile_context>
chip_gen: v7x
topology: tpu7x:2x2x1
jax: 0.10.0
libtpu: 0.0.40
codegen_flags: <defaults>
</compile_context>

<pallas_src>
import functools

import jax
import jax.numpy as jnp
from jax.experimental import pallas as pl
from jax.experimental.pallas import tpu as pltpu


def _round_up(x, m):
    return (x + m - 1) // m * m


# =============================================================================
# Fused hidden-layer LIF-TTFS rollout kernel (soft reset)
# =============================================================================
def _lif_fused_kernel(consts_ref, times_ref,        # SMEM scalars
                      x_ref, thresh_ref,            # VMEM input tiles
                      *out_refs,                    # [spike_ref,] mem_ref, st_ref
                      t_tile, return_spikes):
    if return_spikes:
        spike_ref, mem_ref, st_ref = out_refs
    else:
        mem_ref, st_ref = out_refs
        spike_ref = None

    tb = pl.program_id(2)

    # Canonical reset state (set_neuron_state): mem = 0, spike_time = +inf.
    @pl.when(tb == 0)
    def _():
        mem_ref[...] = jnp.zeros(mem_ref.shape, mem_ref.dtype)
        st_ref[...] = jnp.full(st_ref.shape, jnp.inf, st_ref.dtype)

    alpha = consts_ref[0]                 # exp(-dt), precomputed
    one_minus_alpha = consts_ref[1]       # 1 - exp(-dt), precomputed
    thresh = thresh_ref[...]              # (1, nt), broadcasts over batch

    # Keep state in registers across the Tt inner steps; write back once.
    mem = mem_ref[...]
    st = st_ref[...]
    for i in range(t_tile):               # static unroll, Tt <= 8
        cur_time = times_ref[tb * t_tile + i]
        mask = st == jnp.inf                                   # not yet spiked
        mask_f = mask.astype(jnp.float32)
        mem = alpha * mem + one_minus_alpha * x_ref[i].astype(jnp.float32) * mask_f
        spike = (mem - thresh) > 0.0                           # surrogate fwd: (x > 0)
        new_spikes = jnp.logical_and(spike, mask)
        new_f = new_spikes.astype(jnp.float32)
        st = jnp.where(new_spikes, cur_time, st)
        mem = mem - thresh * new_f                             # soft reset (== spike*thresh*mask)
        if return_spikes:
            spike_ref[i] = spike.astype(spike_ref.dtype)
    mem_ref[...] = mem
    st_ref[...] = st


def lif_ttfs_forward(x_seq, thresh, dt, times, *, bt=None, nt=None,
                     spike_dtype=jnp.bfloat16, return_spikes=True):
    """Run T hidden-layer LIF-TTFS steps (from the canonical reset state) in
    one fused pallas_call.

    x_seq:   (T, B, N) input currents (f32 or bf16; computed in f32).
    thresh:  (N,) thresholds.
    dt:      scalar.
    times:   (T,) current_time value per step (must be finite).
    Returns (spikes (T,B,N), mem, has_spiked, spike_time) if return_spikes,
    else (mem, has_spiked, spike_time).  has_spiked = spike_time < inf.
    """
    T, B, N = x_seq.shape
    f32 = jnp.float32

    # Time-axis blocking: largest divisor of T among {8, 4, 2, 1}.
    t_tile = next(tt for tt in (8, 4, 2, 1) if T % tt == 0)

    # Tile sizes: sublanes multiple of 16 (covers bf16 packing), lanes multiple
    # of 128; sized so double-buffered tiles + resident state fit v7x's 64 MiB.
    if bt is None:
        bt = min(256, _round_up(B, 16))
    if nt is None:
        nt = min(1024, _round_up(N, 128))
    B_pad = _round_up(B, bt)
    N_pad = _round_up(N, nt)
    # v7x has 2 TensorCores: guarantee >= 2 blocks on a parallel axis.
    if (B_pad // bt) * (N_pad // nt) < 2 and nt % 256 == 0:
        nt //= 2

    x_p = x_seq
    if (B_pad, N_pad) != (B, N):
        x_p = jnp.pad(x_seq, ((0, 0), (0, B_pad - B), (0, N_pad - N)))
    thresh_p = thresh.reshape(1, N).astype(f32)
    if N_pad != N:
        thresh_p = jnp.pad(thresh_p, ((0, 0), (0, N_pad - N)), constant_values=1.0)

    alpha = jnp.exp(-jnp.asarray(dt, f32))
    consts = jnp.stack([alpha, 1.0 - alpha]).astype(f32)    # (2,) SMEM
    times = jnp.asarray(times, f32).reshape(T)              # (T,) SMEM

    smem = pl.BlockSpec(memory_space=pltpu.MemorySpace.SMEM)
    state_spec = pl.BlockSpec((bt, nt), lambda b, n, t: (b, n))       # const in t
    seq_spec = pl.BlockSpec((t_tile, bt, nt), lambda b, n, t: (t, b, n))
    thr_spec = pl.BlockSpec((1, nt), lambda b, n, t: (0, n))

    out_shapes = []
    out_specs = []
    if return_spikes:
        out_shapes.append(jax.ShapeDtypeStruct((T, B_pad, N_pad), spike_dtype))
        out_specs.append(seq_spec)
    out_shapes += [jax.ShapeDtypeStruct((B_pad, N_pad), f32),   # mem
                   jax.ShapeDtypeStruct((B_pad, N_pad), f32)]   # spike_time
    out_specs += [state_spec, state_spec]

    kernel = functools.partial(_lif_fused_kernel, t_tile=t_tile,
                               return_spikes=return_spikes)

    results = pl.pallas_call(
        kernel,
        out_shape=tuple(out_shapes),
        grid_spec=pltpu.PrefetchScalarGridSpec(
            num_scalar_prefetch=0,
            grid=(B_pad // bt, N_pad // nt, T // t_tile),
            in_specs=[smem, smem, seq_spec, thr_spec],
            out_specs=tuple(out_specs),
        ),
        compiler_params=pltpu.CompilerParams(
            dimension_semantics=("parallel", "parallel", "arbitrary"),
            vmem_limit_bytes=48 << 20),
    )(consts, times, x_p, thresh_p)

    if return_spikes:
        spikes, mem_o, st_o = results
    else:
        mem_o, st_o = results
        spikes = None

    if (B_pad, N_pad) != (B, N):
        mem_o = mem_o[:B, :N]
        st_o = st_o[:B, :N]
        if spikes is not None:
            spikes = spikes[:, :B, :N]
    hs_o = st_o < jnp.inf                    # has_spiked recomputed (bool)
    if return_spikes:
        return spikes, mem_o, hs_o, st_o
    return mem_o, hs_o, st_o


# =============================================================================
# Output layer: out = (t_min - input_spike_time) @ x + bias
# Tiled MXU matmul, bf16 operands prepared in the wrapper, f32 accumulator.
# =============================================================================
def _output_layer_kernel(lhs_ref, w_ref, bias_ref, out_ref, acc_ref):
    k = pl.program_id(2)

    @pl.when(k == 0)
    def _():
        acc_ref[...] = jnp.zeros_like(acc_ref)

    acc_ref[...] += jnp.dot(lhs_ref[...], w_ref[...],
                            preferred_element_type=jnp.float32)

    @pl.when(k == pl.num_programs(2) - 1)
    def _():
        out_ref[...] = (acc_ref[...] + bias_ref[...]).astype(out_ref.dtype)


def lif_ttfs_output_layer(input_spike_time, w, bias, t_min,
                          *, tm=None, tn=None, tk=None):
    """Output-layer forward.  input_spike_time: (M, K), w: (K, N), bias: (N,).

    For production sizes stack timesteps / batch so M >= 256 to fill the MXU.
    NOTE: neurons that never spiked carry spike_time = +inf, which (like the
    PyTorch module) propagates inf/NaN through the matmul; clamp upstream if
    that is not desired.
    """
    M, K = input_spike_time.shape
    Kw, N = w.shape
    assert K == Kw
    f32 = jnp.float32

    # time_diff computed + cast to bf16 once in the wrapper (halves operand HBM
    # reads and removes a per-grid-step VPU subtract/cast); weights bf16 too.
    lhs = (jnp.asarray(t_min, f32) - input_spike_time).astype(jnp.bfloat16)
    w_bf = w.astype(jnp.bfloat16)

    # Tiles aligned to the 256x256 MXU; full-K accumulation when K is modest.
    if tm is None:
        tm = min(256, _round_up(M, 16))
    if tn is None:
        tn = min(256, _round_up(N, 128))
    if tk is None:
        tk = _round_up(K, 128) if K <= 2048 else 512
    M_pad, N_pad, K_pad = _round_up(M, tm), _round_up(N, tn), _round_up(K, tk)

    if (M_pad, K_pad) != (M, K):
        lhs = jnp.pad(lhs, ((0, M_pad - M), (0, K_pad - K)))
    if (K_pad, N_pad) != (K, N):
        w_bf = jnp.pad(w_bf, ((0, K_pad - K), (0, N_pad - N)))   # zero rows -> no effect
    bias_p = bias.reshape(1, N).astype(f32)
    if N_pad != N:
        bias_p = jnp.pad(bias_p, ((0, 0), (0, N_pad - N)))

    out = pl.pallas_call(
        _output_layer_kernel,
        out_shape=jax.ShapeDtypeStruct((M_pad, N_pad), f32),
        grid_spec=pltpu.PrefetchScalarGridSpec(
            num_scalar_prefetch=0,
            grid=(M_pad // tm, N_pad // tn, K_pad // tk),
            in_specs=[pl.BlockSpec((tm, tk), lambda i, j, k: (i, k)),
                      pl.BlockSpec((tk, tn), lambda i, j, k: (k, j)),
                      pl.BlockSpec((1, tn), lambda i, j, k: (0, j))],
            out_specs=pl.BlockSpec((tm, tn), lambda i, j, k: (i, j)),
            scratch_shapes=[pltpu.VMEM((tm, tn), jnp.float32)]),
        compiler_params=pltpu.CompilerParams(
            dimension_semantics=("parallel", "parallel", "arbitrary")),
    )(lhs, w_bf, bias_p)

    if (M_pad, N_pad) != (M, N):
        out = out[:M, :N]
    return out


# -----------------------------------------------------------------------------
# Pure-JAX references for correctness checking
# -----------------------------------------------------------------------------
def _ref_lif_step(x, mem, has_spiked, spike_time, thresh, dt, current_time):
    alpha = jnp.exp(-dt)
    mask = (~has_spiked).astype(jnp.float32)
    mem = alpha * mem + (1.0 - alpha) * x * mask
    spike = ((mem - thresh[None, :]) > 0.0).astype(jnp.float32)
    new_spikes = jnp.logical_and(spike > 0, ~has_spiked)
    spike_time = jnp.where(new_spikes, current_time, spike_time)
    has_spiked = jnp.logical_or(has_spiked, spike > 0)
    mem = mem - spike * thresh[None, :] * mask
    return spike, mem, has_spiked, spike_time


def _ref_output(input_spike_time, x, bias, t_min):
    return (t_min - input_spike_time) @ x + bias[None, :]


# -----------------------------------------------------------------------------
if __name__ == "__main__":
    key = jax.random.PRNGKey(0)
    k1, k2, k3 = jax.random.split(key, 3)

    # ----- hidden LIF layer: fused rollout over T timesteps -----
    T, batch, num_neurons = 6, 8, 256
    thresh_val, dt_val = 1.0, 1.0

    thresh = jnp.ones((num_neurons,), jnp.float32) * thresh_val   # module init
    dt = jnp.float32(dt_val)
    times = jnp.arange(T, dtype=jnp.float32)                      # current_time per step

    x_seq = jax.random.normal(k1, (T, batch, num_neurons), jnp.float32) * 2.0

    spikes, mem, hs, st = lif_ttfs_forward(x_seq, thresh, dt, times)
    jax.block_until_ready((spikes, mem, hs, st))

    # reference rollout from the canonical reset state (set_neuron_state)
    r_mem = jnp.zeros((batch, num_neurons), jnp.float32)
    r_hs = jnp.zeros((batch, num_neurons), jnp.bool_)
    r_st = jnp.full((batch, num_neurons), jnp.inf, jnp.float32)
    r_spikes = []
    for t in range(T):
        sp, r_mem, r_hs, r_st = _ref_lif_step(
            x_seq[t], r_mem, r_hs, r_st, thresh, dt, times[t])
        r_spikes.append(sp)
    r_spikes = jnp.stack(r_spikes)

    assert jnp.array_equal(spikes.astype(jnp.float32), r_spikes)   # {0,1} exact in bf16
    assert jnp.allclose(mem, r_mem, atol=1e-5)
    assert jnp.array_equal(hs, r_hs)
    assert jnp.array_equal(st, r_st)

    # no-spikes-output path (spike_time only; ~half the HBM traffic)
    mem2, hs2, st2 = lif_ttfs_forward(x_seq, thresh, dt, times,
                                      return_spikes=False)
    jax.block_until_ready((mem2, hs2, st2))
    assert jnp.allclose(mem2, r_mem, atol=1e-5)
    assert jnp.array_equal(st2, r_st)

    # ----- output layer -----
    in_features, out_neurons, t_min = 32, 128, 1.0
    input_spike_time = jax.random.uniform(k2, (batch, in_features), jnp.float32)
    w = jax.random.normal(k3, (in_features, out_neurons), jnp.float32) * 0.1
    bias = jnp.zeros((out_neurons,), jnp.float32)   # module init: zeros

    out = lif_ttfs_output_layer(input_spike_time, w, bias, t_min)
    jax.block_until_ready(out)
    ref_out = _ref_output(input_spike_time, w, bias, t_min)
    # bf16-fed MXU -> compare against f32 reference with bf16-level tolerance.
    assert jnp.allclose(out, ref_out, atol=1e-2, rtol=1e-2)

    # TODO(synk): surrogate gradient (gaussian) is backward-only; not part of forward.
    print("KERNEL_OK")
</pallas_src>

<mosaic_0001>
module attributes {stable_mosaic.version = 11 : i64} {
  func.func @_lif_fused_kernel(%arg0: i32, %arg1: i32, %arg2: i32, %arg3: memref<2xf32, #tpu.memory_space<smem>>, %arg4: memref<6xf32, #tpu.memory_space<smem>>, %arg5: memref<2x16x128xf32, #tpu.memory_space<vmem>>, %arg6: memref<1x128xf32, #tpu.memory_space<vmem>>, %arg7: memref<2x16x128xbf16, #tpu.memory_space<vmem>>, %arg8: memref<16x128xf32, #tpu.memory_space<vmem>>, %arg9: memref<16x128xf32, #tpu.memory_space<vmem>>) attributes {dimension_semantics = [#tpu.dimension_semantics<parallel>, #tpu.dimension_semantics<parallel>, #tpu.dimension_semantics<arbitrary>], iteration_bounds = array<i64: 1, 2, 3>, scalar_prefetch = 0 : i64, scratch_operands = 0 : i64, tpu.core_type = #tpu.core_type<tc>, window_params = [{transform_indices = @transform_0, window_bounds = array<i64: 2>}, {transform_indices = @transform_1, window_bounds = array<i64: 6>}, {transform_indices = @transform_2, window_bounds = array<i64: 2, 16, 128>}, {transform_indices = @transform_3, window_bounds = array<i64: 1, 128>}, {transform_indices = @transform_4, window_bounds = array<i64: 2, 16, 128>}, {transform_indices = @transform_5, window_bounds = array<i64: 16, 128>}, {transform_indices = @transform_6, window_bounds = array<i64: 16, 128>}]} {
    %c0_i32 = arith.constant 0 : i32
    %0 = arith.cmpi eq, %arg2, %c0_i32 : i32
    %1 = arith.extui %0 : i1 to i32
    %c0_i32_0 = arith.constant 0 : i32
    %2 = arith.cmpi ne, %1, %c0_i32_0 : i32
    scf.if %2 {
      %cst_28 = arith.constant 0.000000e+00 : f32
      %78 = vector.broadcast %cst_28 : f32 to vector<16x128xf32>
      %c0_29 = arith.constant 0 : index
      %c0_30 = arith.constant 0 : index
      %79 = vector.load %arg8[%c0_29, %c0_30] : memref<16x128xf32, #tpu.memory_space<vmem>>, vector<16x128xf32>
      tpu.vector_store %arg8[%c0_29, %c0_30], %78 {strides = array<i32>} : memref<16x128xf32, #tpu.memory_space<vmem>>, vector<16x128xf32>,
      %cst_31 = arith.constant 0x7F800000 : f32
      %80 = vector.broadcast %cst_31 : f32 to vector<16x128xf32>
      %c0_32 = arith.constant 0 : index
      %c0_33 = arith.constant 0 : index
      %81 = vector.load %arg9[%c0_32, %c0_33] : memref<16x128xf32, #tpu.memory_space<vmem>>, vector<16x128xf32>
      tpu.vector_store %arg9[%c0_32, %c0_33], %80 {strides = array<i32>} : memref<16x128xf32, #tpu.memory_space<vmem>>, vector<16x128xf32>,
    } else {
    }
    %c0 = arith.constant 0 : index
    %3 = memref.load %arg3[%c0] : memref<2xf32, #tpu.memory_space<smem>>
    %c1 = arith.constant 1 : index
    %4 = memref.load %arg3[%c1] : memref<2xf32, #tpu.memory_space<smem>>
    %c0_1 = arith.constant 0 : index
    %c0_2 = arith.constant 0 : index
    %5 = vector.load %arg6[%c0_1, %c0_2] : memref<1x128xf32, #tpu.memory_space<vmem>>, vector<1x128xf32>
    %c0_3 = arith.constant 0 : index
    %c0_4 = arith.constant 0 : index
    %6 = vector.load %arg8[%c0_3, %c0_4] : memref<16x128xf32, #tpu.memory_space<vmem>>, vector<16x128xf32>
    %c0_5 = arith.constant 0 : index
    %c0_6 = arith.constant 0 : index
    %7 = vector.load %arg9[%c0_5, %c0_6] : memref<16x128xf32, #tpu.memory_space<vmem>>, vector<16x128xf32>
    %c2_i32 = arith.constant 2 : i32
    %8 = arith.muli %arg2, %c2_i32 : i32
    %c0_i32_7 = arith.constant 0 : i32
    %9 = arith.addi %8, %c0_i32_7 : i32
    %10 = arith.index_cast %9 : i32 to index
    %11 = memref.load %arg4[%10] : memref<6xf32, #tpu.memory_space<smem>>
    %cst = arith.constant 0x7F800000 : f32
    %12 = vector.broadcast %cst : f32 to vector<16x128xf32>
    %13 = arith.cmpf oeq, %7, %12 : vector<16x128xf32>
    %14 = arith.extui %13 : vector<16x128xi1> to vector<16x128xi32>
    %15 = arith.sitofp %14 : vector<16x128xi32> to vector<16x128xf32>
    %16 = vector.broadcast %3 : f32 to vector<16x128xf32>
    %17 = arith.mulf %16, %6 : vector<16x128xf32>
    %c0_8 = arith.constant 0 : index
    %c0_9 = arith.constant 0 : index
    %c0_10 = arith.constant 0 : index
    %18 = vector.load %arg5[%c0_8, %c0_9, %c0_10] : memref<2x16x128xf32, #tpu.memory_space<vmem>>, vector<1x16x128xf32>
    %19 = vector.shape_cast %18 : vector<1x16x128xf32> to vector<16x128xf32>
    %20 = vector.broadcast %4 : f32 to vector<16x128xf32>
    %21 = arith.mulf %20, %19 : vector<16x128xf32>
    %22 = arith.mulf %21, %15 : vector<16x128xf32>
    %23 = arith.addf %17, %22 : vector<16x128xf32>
    %24 = vector.broadcast %5 : vector<1x128xf32> to vector<16x128xf32>
    %25 = arith.subf %23, %24 : vector<16x128xf32>
    %cst_11 = arith.constant 0.000000e+00 : f32
    %26 = vector.broadcast %cst_11 : f32 to vector<16x128xf32>
    %27 = arith.cmpf ogt, %25, %26 : vector<16x128xf32>
    %28 = arith.andi %27, %13 : vector<16x128xi1>
    %29 = arith.extui %28 : vector<16x128xi1> to vector<16x128xi32>
    %30 = arith.sitofp %29 : vector<16x128xi32> to vector<16x128xf32>
    %31 = vector.broadcast %11 : f32 to vector<16x128xf32>
    %32 = arith.select %28, %31, %7 : vector<16x128xi1>, vector<16x128xf32>
    %33 = vector.broadcast %5 : vector<1x128xf32> to vector<16x128xf32>
    %34 = arith.mulf %33, %30 : vector<16x128xf32>
    %35 = arith.subf %23, %34 : vector<16x128xf32>
    %36 = arith.extui %27 : vector<16x128xi1> to vector<16x128xi32>
    %37 = arith.sitofp %36 : vector<16x128xi32> to vector<16x128xf32>
    %38 = arith.truncf %37 : vector<16x128xf32> to vector<16x128xbf16>
    %c0_12 = arith.constant 0 : index
    %c0_13 = arith.constant 0 : index
    %c0_14 = arith.constant 0 : index
    %39 = vector.load %arg7[%c0_12, %c0_13, %c0_14] : memref<2x16x128xbf16, #tpu.memory_space<vmem>>, vector<1x16x128xbf16>
    %40 = vector.shape_cast %39 : vector<1x16x128xbf16> to vector<16x128xbf16>
    %41 = vector.shape_cast %38 : vector<16x128xbf16> to vector<1x16x128xbf16>
    tpu.vector_store %arg7[%c0_12, %c0_13, %c0_14], %41 {strides = array<i32>} : memref<2x16x128xbf16, #tpu.memory_space<vmem>>, vector<1x16x128xbf16>,
    %c2_i32_15 = arith.constant 2 : i32
    %42 = arith.muli %arg2, %c2_i32_15 : i32
    %c1_i32 = arith.constant 1 : i32
    %43 = arith.addi %42, %c1_i32 : i32
    %44 = arith.index_cast %43 : i32 to index
    %45 = memref.load %arg4[%44] : memref<6xf32, #tpu.memory_space<smem>>
    %cst_16 = arith.constant 0x7F800000 : f32
    %46 = vector.broadcast %cst_16 : f32 to vector<16x128xf32>
    %47 = arith.cmpf oeq, %32, %46 : vector<16x128xf32>
    %48 = arith.extui %47 : vector<16x128xi1> to vector<16x128xi32>
    %49 = arith.sitofp %48 : vector<16x128xi32> to vector<16x128xf32>
    %50 = vector.broadcast %3 : f32 to vector<16x128xf32>
    %51 = arith.mulf %50, %35 : vector<16x128xf32>
    %c1_17 = arith.constant 1 : index
    %c0_18 = arith.constant 0 : index
    %c0_19 = arith.constant 0 : index
    %52 = vector.load %arg5[%c1_17, %c0_18, %c0_19] : memref<2x16x128xf32, #tpu.memory_space<vmem>>, vector<1x16x128xf32>
    %53 = vector.shape_cast %52 : vector<1x16x128xf32> to vector<16x128xf32>
    %54 = vector.broadcast %4 : f32 to vector<16x128xf32>
    %55 = arith.mulf %54, %53 : vector<16x128xf32>
    %56 = arith.mulf %55, %49 : vector<16x128xf32>
    %57 = arith.addf %51, %56 : vector<16x128xf32>
    %58 = vector.broadcast %5 : vector<1x128xf32> to vector<16x128xf32>
    %59 = arith.subf %57, %58 : vector<16x128xf32>
    %cst_20 = arith.constant 0.000000e+00 : f32
    %60 = vector.broadcast %cst_20 : f32 to vector<16x128xf32>
    %61 = arith.cmpf ogt, %59, %60 : vector<16x128xf32>
    %62 = arith.andi %61, %47 : vector<16x128xi1>
    %63 = arith.extui %62 : vector<16x128xi1> to vector<16x128xi32>
    %64 = arith.sitofp %63 : vector<16x128xi32> to vector<16x128xf32>
    %65 = vector.broadcast %45 : f32 to vector<16x128xf32>
    %66 = arith.select %62, %65, %32 : vector<16x128xi1>, vector<16x128xf32>
    %67 = vector.broadcast %5 : vector<1x128xf32> to vector<16x128xf32>
    %68 = arith.mulf %67, %64 : vector<16x128xf32>
    %69 = arith.subf %57, %68 : vector<16x128xf32>
    %70 = arith.extui %61 : vector<16x128xi1> to vector<16x128xi32>
    %71 = arith.sitofp %70 : vector<16x128xi32> to vector<16x128xf32>
    %72 = arith.truncf %71 : vector<16x128xf32> to vector<16x128xbf16>
    %c1_21 = arith.constant 1 : index
    %c0_22 = arith.constant 0 : index
    %c0_23 = arith.constant 0 : index
    %73 = vector.load %arg7[%c1_21, %c0_22, %c0_23] : memref<2x16x128xbf16, #tpu.memory_space<vmem>>, vector<1x16x128xbf16>
    %74 = vector.shape_cast %73 : vector<1x16x128xbf16> to vector<16x128xbf16>
    %75 = vector.shape_cast %72 : vector<16x128xbf16> to vector<1x16x128xbf16>
    tpu.vector_store %arg7[%c1_21, %c0_22, %c0_23], %75 {strides = array<i32>} : memref<2x16x128xbf16, #tpu.memory_space<vmem>>, vector<1x16x128xbf16>,
    %c0_24 = arith.constant 0 : index
    %c0_25 = arith.constant 0 : index
    %76 = vector.load %arg8[%c0_24, %c0_25] : memref<16x128xf32, #tpu.memory_space<vmem>>, vector<16x128xf32>
    tpu.vector_store %arg8[%c0_24, %c0_25], %69 {strides = array<i32>} : memref<16x128xf32, #tpu.memory_space<vmem>>, vector<16x128xf32>,
    %c0_26 = arith.constant 0 : index
    %c0_27 = arith.constant 0 : index
    %77 = vector.load %arg9[%c0_26, %c0_27] : memref<16x128xf32, #tpu.memory_space<vmem>>, vector<16x128xf32>
    tpu.vector_store %arg9[%c0_26, %c0_27], %66 {strides = array<i32>} : memref<16x128xf32, #tpu.memory_space<vmem>>, vector<16x128xf32>,
    return
  }
  func.func @transform_0(%arg0: i32, %arg1: i32, %arg2: i32) -> i32 {
    %c0_i32 = arith.constant 0 : i32
    %c0_i32_0 = arith.constant 0 : i32
    return %c0_i32 : i32
  }
  func.func @transform_1(%arg0: i32, %arg1: i32, %arg2: i32) -> i32 {
    %c0_i32 = arith.constant 0 : i32
    %c0_i32_0 = arith.constant 0 : i32
    return %c0_i32 : i32
  }
  func.func @transform_2(%arg0: i32, %arg1: i32, %arg2: i32) -> (i32, i32, i32) {
    %c0_i32 = arith.constant 0 : i32
    return %arg2, %arg0, %arg1 : i32, i32, i32
  }
  func.func @transform_3(%arg0: i32, %arg1: i32, %arg2: i32) -> (i32, i32) {
    %c0_i32 = arith.constant 0 : i32
    %c0_i32_0 = arith.constant 0 : i32
    return %c0_i32, %arg1 : i32, i32
  }
  func.func @transform_4(%arg0: i32, %arg1: i32, %arg2: i32) -> (i32, i32, i32) {
    %c0_i32 = arith.constant 0 : i32
    return %arg2, %arg0, %arg1 : i32, i32, i32
  }
  func.func @transform_5(%arg0: i32, %arg1: i32, %arg2: i32) -> (i32, i32) {
    %c0_i32 = arith.constant 0 : i32
    return %arg0, %arg1 : i32, i32
  }
  func.func @transform_6(%arg0: i32, %arg1: i32, %arg2: i32) -> (i32, i32) {
    %c0_i32 = arith.constant 0 : i32
    return %arg0, %arg1 : i32, i32
  }
}

</mosaic_0001>

<bundles_post_ra>
// kernel: tpu_custom_call.1
= control target key start
LH: loop header
LB: loop body
LE: loop exit
PB: predicated region body
PF: predicated region fallthrough
CT: control target
= control target key end

     0   :  { %s1729_s0 = inlined_call_operand.hbm [shape: f32[2], index: 0, kind: input, shape index: {}]   ;;  %s1730_s1 = inlined_call_operand.vmem [shape: f32[6], index: 1, kind: input, shape index: {}]   ;;  %s1731_s2 = inlined_call_operand.hbm [shape: f32[6,16,256], index: 2, kind: input, shape index: {}]   ;;  %s1732_s3 = inlined_call_operand.vmem [shape: f32[1,256], index: 3, kind: input, shape index: {}]   ;;  %s1733_s4 = inlined_call_operand.hbm [shape: bf16[6,16,256], index: 4, kind: output, shape index: {0}]   ;;  %s1734_s5 = inlined_call_operand.hbm [shape: f32[16,256], index: 5, kind: output, shape index: {1}]   ;;  %s1735_s6 = inlined_call_operand.hbm [shape: f32[16,256], index: 6, kind: output, shape index: {2}]  }
   0x1   :  { %1754 = sst [smem:[#allocation27_spill]] %s1729_s0 }
   0x2   :  { %1755 = sst [smem:[#allocation28_spill]] %s1730_s1 }
   0x3   :  { %1756 = sst [smem:[#allocation29_spill]] %s1731_s2 }
   0x4   :  { %1757 = sst [smem:[#allocation30_spill]] %s1732_s3 }
   0x5   :  { %1758 = sst [smem:[#allocation31_spill]] %s1733_s4 }
   0x6   :  { %1759 = sst [smem:[#allocation32_spill]] %s1735_s6 }
   0x7   :  { %12 = vsyncpa [#allocation5], 0 }
   0x8   :  { %13 = vsyncpa [#allocation6], 0 }
   0x9   :  { %14 = vsyncpa [#allocation3], 0 }
   0xa   :  { %16 = vsyncpa [#allocation3 + $0x1], 0 }
   0xb   :  { %17 = vsyncpa [#allocation4], 0 }
   0xc   :  { %19 = vsyncpa [#allocation4 + $0x1], 0 }
   0xd   :  { %20 = vsyncpa [#allocation11], 0 }
   0xe   :  { %22 = vsyncpa [#allocation11 + $0x1], 0  ;;  %s1264_s21 = smov 0   ;;  %s1266_s22 = smov 0  }
   0xf   :  { %s1268_s23 = smov 0   ;;  %s1270_s24 = smov 0  }
  0x10   :  { %s1272_s25 = smov 0   ;;  %s1274_s26 = smov 0  }
  0x11   :  { %s1276_s27 = smov 0   ;;  %s1278_s28 = smov 0  }
  0x12   :  { %s1280_s29 = smov 0   ;;  %s1282_s30 = smov 0  }
  0x13   :  { %s1284_s7 = smov 0  }
  0x14 LB: > { %1760 = sst [smem:[#allocation18_spill]] %s1182_s24  ;;  %s1320_s8 = sadd.s32 4294967295, %s1210_s7   ;;  %s1210_s7 = sphi %s1284_s7, %s28_s7   ;;  %s1206_s30 = sphi %s1282_s30, %s1809_s30   ;;  %s1202_s29 = sphi %s1280_s29, %s1816_s29   ;;  %s1198_s28 = sphi %s1278_s28, %s1807_s28   ;;  %s1194_s27 = sphi %s1276_s27, %s1806_s27   ;;  %s1190_s26 = sphi %s1274_s26, %s1815_s26   ;;  %s1186_s25 = sphi %s1272_s25, %s1814_s25   ;;  %s1182_s24 = sphi %s1270_s24, %s1813_s24   ;;  %s1178_s23 = sphi %s1268_s23, %s1812_s23   ;;  %s1174_s22 = sphi %s1266_s22, %s1811_s22   ;;  %s1170_s21 = sphi %s1264_s21, %s1810_s21  }
  0x15   : > { %1761 = sst [smem:[#allocation19_spill]] %s1202_s29  ;;  %s1737_s9 = sadd.s32 4294967294, %s1210_s7  }
  0x16   : > { %1762 = sst [smem:[#allocation20_spill]] %s1206_s30  ;;  %p107_p0 = scmp.ne.s32.totalorder %s1190_s26, %s1186_s25 }
  0x17   : > { %1763 = sst [smem:[#allocation21_spill]] %s1210_s7  ;;  %p108_p1 = scmp.eq.s32.totalorder %s1210_s7, 0 }
  0x18   : > { %p113_p2 = scmp.ne.s32.totalorder %s1186_s25, %s1182_s24  ;;  %p1736_p3 = scmp.eq.s32.totalorder %s1320_s8, 0 }
  0x19   : > { %p167_p4 = scmp.eq.s32.totalorder %s1320_s8, 5  ;;  %p1331_p5 = por %p108_p1, %p107_p0 }
  0x1a   : > { %p173_p6 = scmp.eq.s32.totalorder %s1737_s9, 5  ;;  %p1339_p7 = por %p1736_p3, %p113_p2 }
  0x1b   : > { %p1343_p8 = por %p167_p4, %p107_p0  ;;  %p194_p10 = scmp.ne.s32.totalorder %s1178_s23, %s1174_s22 }
  0x1c   : > { %s1765_s12 = scalar_select %p1339_p7, 1, 0 }
  0x1d   : > { %s1766_s13 = scalar_select %p1343_p8, 1, 0 }
  0x1e   : > { %p1347_p9 = por %p173_p6, %p113_p2  ;;  %p200_p11 = scmp.ne.s32.totalorder %s1174_s22, %s1170_s21 }
  0x1f   : > { %p756_p12 = scmp.ge.s32.totalorder %s1210_s7, 1  ;;  %p236_p13 = scmp.lt.s32.totalorder %s1210_s7, 7 }
  0x20   : > { %s1767_s14 = scalar_select %p1347_p9, 1, 0 }
  0x21   : > { %p1358_p1 = por %p194_p10, %p167_p4  ;;  %p1362_p3 = por %p200_p11, %p173_p6 }
  0x22   : > { %1768 = sst [smem:[#allocation22_spill]] %s1767_s14  ;;  %p1366_p0 = pnand %p756_p12, %p236_p13 }
  0x23   : > { %s1769_s16 = scalar_select %p1358_p1, 1, 0 }
  0x24   : > { %s1771_s17 = scalar_select %p1362_p3, 1, 0 }
  0x25   : > { %1770 = sst [smem:[#allocation23_spill]] %s1769_s16  ;;  %p834_p2 = pneg %p1366_p0 }
  0x26   : > { %1772 = sst [smem:[#allocation24_spill]] %s1771_s17  ;;  %p857_p9 = scmp.lt.s32.totalorder %s1210_s7, 6 }
  0x27   : > { %s1774_s1 = sld [smem:[#allocation28_spill]]  ;;  %p1775_p4 = scmp.eq.s32.totalorder %s1320_s8, 0 }
  0x28   : > { %p1384_p6 = pnand %p857_p9, %p1331_p5  ;;  %s1778_s0 = sld [smem:[#allocation27_spill]] }
  0x29   : > { %p1378_p10 = pnand %p834_p2, %p1775_p4 }
  0x2b   : > { %p964_p12 = pneg %p1378_p10 }
  0x2d   : > { %s258_s21 = sshll.u32 %s1774_s1, 4  ;;  %s259_s21 = int_to_ptr.vmem [resolvable:$true] %s258_s21 }
  0x2e   : > { %s962_s14 = scalar_lea.hbm %s1778_s0, 16 }
  0x2f   : > { %p963_p11 = scmp.ne.s32.totalorder %s1778_s0, %s962_s14  ;;  %p969_p5 = scmp.lt.u32.totalorder %s962_s14, %s1778_s0 }
  0x31   : > { %p965_p13 = pnand %p964_p12, %p963_p11 }
  0x33   : > { %p966_p2 = pneg %p965_p13 }
  0x35   : > { %p971_p9 = pnand %p969_p5, %p966_p2 }
  0x37   : > { %974 = shalt.err (!%p971_p9)
}
  0x38   : > { %s1212_s20 = smov [#allocation2]   ;;  %s975_s17 = scalar_lea.vmem %s259_s21, 16 }
  0x39   : > { %837 = dma.hbm_to_smem (!%p1378_p10), %s1778_s0, 16, %s1212_s20, [#allocation5]  }
  0x3a   : > { %p976_p4 = scmp.ne.s32.totalorder %s259_s21, %s975_s17  ;;  %p983_p8 = scmp.lt.s32.totalorder %s259_s21, %s259_s21 }
  0x3b   : > { %p984_p11 = scmp.lt.s32.totalorder %s975_s17, %s975_s17 }
  0x3c   : > { %p978_p3 = pnand %p976_p4, %p964_p12 }
  0x3d   : > { %p985_p13 = por %p984_p11, %p983_p8 }
  0x3e   : > { %p979_p1 = pneg %p978_p3 }
  0x40   : > { %p986_p7 = pnand %p985_p13, %p979_p1 }
  0x42   : > { %989 = shalt.err (!%p986_p7)
}
  0x43   : > { %s1213_s24 = smov [#allocation7]   ;;  %s40_s1 = sadd.s32 1, %s1202_s29 }
  0x44   : > { %840 = dma.vmem_to_smem (!%p1378_p10), %s259_s21, 16, %s1213_s24, [#allocation6]  }
  0x45   : > { %p41_p12 = scmp.ge.s32.totalorder %s40_s1, 3  ;;  %s43_s7 = sadd.s32 1, %s1206_s30 }
  0x46   : > { %s269_s14 = sand.u32 1, %s1190_s26   ;;  %s805_s19 = sshll.u32 %s1202_s29, 3 }
  0x47   : > { %s1818_s1 = smov (%p41_p12, %s40_s1), 0  ;;  %s1820_s7 = smov (!%p41_p12, %s43_s7), %s1206_s30 }
  0x48   : > { %1779 = sst [smem:[#allocation25_spill]] %s1818_s1  ;;  %s93_s9 = ssub.s32 %s1202_s29, %s1818_s1 }
  0x49   : > { %p45_p3 = scmp.ge.s32.totalorder %s1820_s7, 2  ;;  %s760_s11 = sshll.u32 %s269_s14, 5 }
  0x4a   : > { %s282_s20 = sadd.s32 %s1206_s30, %s805_s19  ;;  %s273_s15 = scalar_lea.vmem [#allocation8], %s760_s11 }
  0x4b   : > { %s1822_s7 = smov (%p45_p3, %s1820_s7), 0  ;;  %s763_s21 = sshll.u32 %s282_s20, 7 }
  0x4c   : > { %1780 = sst [smem:[#allocation26_spill]] %s1822_s7  ;;  %s285_s17 = sshll.u32 %s273_s15, 4  ;;  %s1425_s17 = int_to_ptr.vmem [resolvable:$true] %s285_s17 }
  0x4d   : > { %s96_s24 = ssub.s32 %s1206_s30, %s1822_s7  ;;  %s1781_s2 = sld [smem:[#allocation29_spill]] }
  0x4e   : > { %s97_s1 = sor.u32 %s96_s24, %s93_s9  ;;  %p182_p7 = scmp.eq.s32.totalorder %s96_s24, 0 }
  0x4f   : > { %p98_p8 = scmp.eq.s32.totalorder %s97_s1, 0  ;;  %s1782_s19 = sadd.s32 1, %s1178_s23 }
  0x50   : > { %s1430_s29 = scalar_select %p182_p7, %s1178_s23, %s1782_s19  }
  0x51   : > { %s1783_s11 = sadd.s32 1, %s1190_s26  ;;  %s1437_s15 = scalar_lea.sflag [#allocation3], %s269_s14 }
  0x52   : > { %s1435_s20 = scalar_select %p98_p8, %s1190_s26, %s1783_s11  }
  0x53   : > { %s1423_s16 = scalar_lea.hbm %s1781_s2, %s763_s21  ;;  %p992_p10 = pneg %p1384_p6 }
  0x54   : > { %s990_s0 = scalar_lea.hbm %s1423_s16, 512  ;;  %s995_s9 = scalar_lea.hbm %s1781_s2, 3072 }
  0x55   : > { %p991_p1 = scmp.ne.s32.totalorder %s1423_s16, %s990_s0  ;;  %p996_p9 = scmp.lt.u32.totalorder %s1423_s16, %s1781_s2 }
  0x56   : > { %p997_p4 = scmp.lt.u32.totalorder %s995_s9, %s990_s0  ;;  %p999_p13 = scmp.lt.u32.totalorder %s990_s0, %s1423_s16 }
  0x57   : > { %p993_p2 = pnand %p992_p10, %p991_p1 }
  0x58   : > { %p998_p11 = por %p997_p4, %p996_p9 }
  0x59   : > { %p994_p5 = pneg %p993_p2 }
  0x5a   : > { %p1000_p12 = por %p999_p13, %p998_p11 }
  0x5c   : > { %p1001_p3 = pnand %p1000_p12, %p994_p5 }
  0x5e   : > { %1004 = shalt.err (!%p1001_p3)
}
  0x5f   : > { %s1005_s14 = scalar_lea.vmem %s1425_s17, 512  ;;  %s1214_s19 = smov [#allocation8]  }
  0x60   : > { %p1006_p7 = scmp.ne.s32.totalorder %s1425_s17, %s1005_s14  ;;  %s1010_s11 = sshll.u32 %s1214_s19, 4  ;;  %s1011_s11 = int_to_ptr.vmem [resolvable:$false] %s1010_s11 }
  0x61   : > { %s1012_s6 = scalar_lea.vmem %s1011_s11, 1024  ;;  %p1013_p2 = scmp.lt.s32.totalorder %s1425_s17, %s1011_s11 }
  0x62   : > { %p1008_p8 = pnand %p1006_p7, %p992_p10  ;;  %p1014_p9 = scmp.lt.s32.totalorder %s1012_s6, %s1005_s14 }
  0x64   : > { %p1009_p1 = pneg %p1008_p8  ;;  %p1015_p4 = por %p1014_p9, %p1013_p2 }
  0x66   : > { %p1016_p11 = pnand %p1015_p4, %p1009_p1 }
  0x68   : > { %1019 = shalt.err (!%p1016_p11)
}
  0x69   : > { %s1215_s0 = smov 256   ;;  %s1216_s1 = smov 128  }
  0x6a   : > { %s1217_s9 = smov 8   ;;  %303 = sbr.rel (%p1366_p0) target bundleno = 238 (0xee), region = 36 }
  0x6b   : > { %844 = dma.hbm_to_vmem [thread:$0]  (!%p1384_p6), %s1423_s16, 512, %s1425_s17, %s1437_s15, %s1215_s0, %s1216_s1, %s1217_s9  }
  0x6c   : > { %p1784_p10 = scmp.eq.s32.totalorder (!%p1366_p0), %s1320_s8, 0 }
  0x71   : > { %1149 = dma.done.wait (%p1784_p10), [#allocation5], 16   ;;  %p1785_p5 = pmov %p1784_p10 }
  0x73   : > { %1151 = vsyncadd (%p1785_p5), [#allocation5], 4294967280  ;;  %p1786_p13 = pmov %p1785_p5 }
  0x74   : > { %p1787_p12 = pmov %p1785_p5 }
  0x75   : > { %1153 = dma.done.wait (%p1786_p13), [#allocation6], 16  }
  0x76   : > { %1155 = vsyncadd (%p1787_p12), [#allocation6], 4294967280  ;;  %s1476_s21 = sand.u32 1, %s1186_s25   ;;  %p1788_p0 = scmp.ne.s32.totalorder %s1765_s12, 0 }
  0x77   : > { %s767_s10 = sshll.u32 %s1476_s21, 5  ;;  %s314_s16 = scalar_lea.sflag [#allocation3], %s1476_s21 }
  0x78   : > { %s1480_s18 = scalar_lea.vmem [#allocation8], %s767_s10 }
  0x79   : > { %1157 = dma.done.wait (%p1788_p0), %s314_s16, 512  }
  0x7a   : > { %1159 = vsyncadd (%p1788_p0), %s314_s16, 4294966784 }
  0x7b   : > { %322 = sfence }
  0x7c   : > { %s768_s17 = sshll.u32 %s1476_s21, 4  ;;  %s350_s15 = sand.u32 1, %s1174_s22  }
  0x7d   : > { %s769_s24 = sshll.u32 %s350_s15, 4  ;;  %p362_p6 = scmp.lt.s32.totalorder %s1198_s28, 1 }
  0x7e   : > { %s1789_s3 = sld [smem:[#allocation30_spill]]  ;;  %s1496_s0 = scalar_lea.vmem [#allocation9], %s768_s17 }
  0x7f   : > { %s1490_s14 = scalar_select %p362_p6, %s1198_s28, 1 }
  0x80   : > { %s1498_s12 = scalar_lea.vmem [#allocation10], %s769_s24  ;;  %s1500_s1 = scalar_lea.vmem [#allocation12], %s769_s24 }
  0x81   : > { %p771_p3 = scmp.ne.s32.totalorder %s1194_s27, 0 }
  0x82   : > { %v1218_v0 = vmov (!%p771_p3), 0.0   ;;  %v1219_v1 = vmov (!%p771_p3), inf  }
  0x83   : > { %372 = sbr.rel (%p771_p3) target bundleno = 138 (0x8a), region = 52  ;;  %373 = vst [vmem:[%s1498_s12] sm:$0xff] (!%p771_p3), %v1218_v0  ;;  %374 = vst [vmem:[%s1498_s12 + $0x8] sm:$0xff] (!%p771_p3), %v1218_v0 }
  0x84   : > { %s364_s6 = scalar_lea.vmem %s1789_s3, %s1490_s14  ;;  %375 = vst [vmem:[%s1500_s1] sm:$0xff] (!%p771_p3), %v1219_v1  ;;  %376 = vst [vmem:[%s1500_s1 + $0x8] sm:$0xff] (!%p771_p3), %v1219_v1 }
  0x8a PF: > { %s377_s9 = sld [smem:[#allocation2]]  ;;  %s772_s10 = sld [smem:[#allocation2 + $0x1]]  ;;  %v380_v4 = vld [vmem:[%s1498_s12] sm:$0xff]  ;;  %v381_v6 = vld [vmem:[%s1498_s12 + $0x8] sm:$0xff]  ;;  %v1220_v8 = vmov 0.0  }
  0x8b   : > { %v382_v2 = vld [vmem:[%s1500_s1] sm:$0xff]  ;;  %v383_v3 = vld [vmem:[%s1500_s1 + $0x8] sm:$0xff]  ;;  %s773_s16 = sshll.u32 %s1194_s27, 1  ;;  %s810_s19 = sshll.u32 %s1194_s27, 3 }
  0x8c   : > { %vm386_vm0 = vcmp.eq.f32.partialorder %v382_v2, inf  ;;  %v395_v5 = vld [vmem:[%s1480_s18] sm:$0xff]  ;;  %vm387_vm1 = vcmp.eq.f32.partialorder %v383_v3, inf  ;;  %v396_v7 = vld [vmem:[%s1480_s18 + $0x8] sm:$0xff]  ;;  %s1516_s17 = sld [smem:[#allocation7 + %s773_s16]]  ;;  %v785_v23 = vld [vmem:[%s1480_s18 + $0x10] sm:$0xff] }
  0x8d   : > { %v774_v9 = vsel %vm386_vm0, 1.0, %v1220_v8  ;;  %v775_v14 = vsel %vm387_vm1, 1.0, %v1220_v8  ;;  %v1527_v18 = vld [vmem:[%s364_s6] ss:$0 sm:$0xff]  ;;  %s441_s14 = sadd.s32 1, %s773_s16  ;;  %s522_s6 = sadd.s32 %s1198_s28, %s810_s19 }
  0x8e   : > { %v786_v26 = vld [vmem:[%s1480_s18 + $0x18] sm:$0xff]  ;;  %s1546_s18 = sld [smem:[#allocation7 + %s441_s14]]  ;;  %s525_s16 = sshll.u32 %s1496_s0, 4  ;;  %s1583_s16 = int_to_ptr.vmem [resolvable:$true] %s525_s16 }
  0x8f   : > { %s543_s24 = sshll.u32 %s1498_s12, 4  ;;  %s1791_s4 = sld [smem:[#allocation31_spill]]  ;;  %s1590_s24 = int_to_ptr.vmem [resolvable:$true] %s543_s24 }
  0x90   : > { %v392_v10 = vstv %s377_s9  ;;  %v397_v11 = vstv %s772_s10  ;;  %s1751_s9 = sshll.u32 %s1198_s28, 7  ;;  %s800_s10 = sshll.u32 %s522_s6, 6 }
  0x91   : > { %v393_v12 = vmul.f32 %v392_v10, %v380_v4  ;;  %v398_v13 = vmul.f32 %v397_v11, %v395_v5  ;;  %v394_v15 = vmul.f32 %v392_v10, %v381_v6  ;;  %v399_v16 = vmul.f32 %v397_v11, %v396_v7  ;;  %s1570_s15 = scalar_lea.hbm %s1734_s5, %s1751_s9  ;;  %s1020_s27 = scalar_lea.vmem %s1583_s16, 256 }
  0x92   : > { %v420_v24 = vstv %s1516_s17  ;;  %v454_v27 = vmul.f32 %v785_v23, %v397_v11  ;;  %v455_v31 = vmul.f32 %v786_v26, %v397_v11  ;;  %p1021_p7 = scmp.ne.s32.totalorder %s1583_s16, %s1020_s27  ;;  %p1792_p8 = scmp.ne.s32.totalorder %s1766_s13, 0 }
  0x93   : > { %v400_v17 = vmul.f32 %v774_v9, %v398_v13  ;;  %v401_v19 = vmul.f32 %v775_v14, %v399_v16  ;;  %s1221_s17 = smov [#allocation9]  }
  0x94   : > { %v470_v50 = vstv %s1546_s18  ;;  %p1022_p1 = pnand %p1021_p7, %p1792_p8  ;;  %s1024_s14 = sshll.u32 %s1221_s17, 4  ;;  %s1025_s14 = int_to_ptr.vmem [resolvable:$false] %s1024_s14 }
  0x95   : > { %v402_v20 = vadd.f32 %v400_v17, %v393_v12  ;;  %v403_v21 = vadd.f32 %v401_v19, %v394_v15  ;;  %s1581_s19 = scalar_lea.hbm %s1791_s4, %s800_s10  ;;  %s497_s10 = scalar_lea.sflag [#allocation4], %s1476_s21 }
  0x96   : > { %p1023_p2 = pneg %p1022_p1  ;;  %s1026_s18 = scalar_lea.vmem %s1025_s14, 512 }
  0x97   : > { %v410_v22 = vsub.f32 %v402_v20, %v1527_v18  ;;  %v411_v25 = vsub.f32 %v403_v21, %v1527_v18  ;;  %p1027_p9 = scmp.lt.s32.totalorder %s1583_s16, %s1025_s14  ;;  %p1028_p4 = scmp.lt.s32.totalorder %s1026_s18, %s1020_s27 }
  0x99   : > { %vm412_vm2 = vcmp.gt.f32.partialorder %v410_v22, 0.0  ;;  %vm413_vm4 = vcmp.gt.f32.partialorder %v411_v25, 0.0  ;;  %p1029_p11 = por %p1028_p4, %p1027_p9 }
  0x9a   : > { %vm414_vm3 = vmand %vm412_vm2, %vm386_vm0  ;;  %v779_v28 = vsel %vm412_vm2, 1.0, %v1220_v8  ;;  %v780_v32 = vsel %vm413_vm4, 1.0, %v1220_v8 }
  0x9b   : > { %v777_v29 = vsel %vm414_vm3, 1.0, %v1220_v8  ;;  %v421_v30 = vsel %vm414_vm3, %v420_v24, %v382_v2  ;;  %vm415_vm5 = vmand %vm413_vm4, %vm387_vm1  ;;  %v812_v38 = vpack.c.bf16 %v780_v32, %v779_v28  ;;  %p1030_p10 = pnand %p1029_p11, %p1023_p2 }
  0x9c   : > { %v423_v33 = vmul.f32 %v777_v29, %v1527_v18  ;;  %vm443_vm6 = vcmp.eq.f32.partialorder %v421_v30, inf  ;;  %v778_v34 = vsel %vm415_vm5, 1.0, %v1220_v8  ;;  %v422_v35 = vsel %vm415_vm5, %v420_v24, %v383_v3 }
  0x9d   : > { %v783_v36 = vsel %vm443_vm6, 1.0, %v1220_v8  ;;  %v424_v37 = vmul.f32 %v778_v34, %v1527_v18  ;;  %vm444_vm7 = vcmp.eq.f32.partialorder %v422_v35, inf  ;;  %813 = vst [vmem:[%s1496_s0] sm:$0xff] %v812_v38  }
  0x9e   : > { %v425_v39 = vsub.f32 %v402_v20, %v423_v33  ;;  %v456_v40 = vmul.f32 %v783_v36, %v454_v27  ;;  %v784_v41 = vsel %vm444_vm7, 1.0, %v1220_v8 }
  0x9f   : > { %v426_v42 = vsub.f32 %v403_v21, %v424_v37  ;;  %v457_v43 = vmul.f32 %v784_v41, %v455_v31 }
  0xa0   : > { %v449_v44 = vmul.f32 %v425_v39, %v392_v10 }
  0xa1   : > { %v450_v45 = vmul.f32 %v426_v42, %v392_v10 }
  0xa2   : > { %v1553_v46 = vadd.f32 %v456_v40, %v449_v44 }
  0xa3   : > { %v1556_v47 = vadd.f32 %v457_v43, %v450_v45 }
  0xa4   : > { %v460_v48 = vsub.f32 %v1553_v46, %v1527_v18 }
  0xa5   : > { %v461_v49 = vsub.f32 %v1556_v47, %v1527_v18 }
  0xa6   : > { %vm462_vm8 = vcmp.gt.f32.partialorder %v460_v48, 0.0 }
  0xa7   : > { %vm464_vm9 = vmand %vm462_vm8, %vm443_vm6  ;;  %vm463_vm10 = vcmp.gt.f32.partialorder %v461_v49, 0.0  ;;  %v789_v51 = vsel %vm462_vm8, 1.0, %v1220_v8 }
  0xa8   : > { %v787_v52 = vsel %vm464_vm9, 1.0, %v1220_v8  ;;  %vm465_vm11 = vmand %vm463_vm10, %vm444_vm7  ;;  %v790_v53 = vsel %vm463_vm10, 1.0, %v1220_v8  ;;  %v471_v54 = vsel %vm464_vm9, %v470_v50, %v421_v30 }
  0xa9   : > { %v473_v55 = vmul.f32 %v787_v52, %v1527_v18  ;;  %v788_v56 = vsel %vm465_vm11, 1.0, %v1220_v8  ;;  %v815_v57 = vpack.c.bf16 %v790_v53, %v789_v51  ;;  %494 = vst [vmem:[%s1500_s1] sm:$0xff] %v471_v54  ;;  %v472_v58 = vsel %vm465_vm11, %v470_v50, %v422_v35 }
  0xaa   : > { %v474_v59 = vmul.f32 %v788_v56, %v1527_v18  ;;  %495 = vst [vmem:[%s1500_s1 + $0x8] sm:$0xff] %v472_v58 }
  0xab   : > { %v475_v60 = vsub.f32 %v1553_v46, %v473_v55  ;;  %817 = vst [vmem:[%s1496_s0 + $0x8] sm:$0xff] %v815_v57  }
  0xac   : > { %v476_v61 = vsub.f32 %v1556_v47, %v474_v59 }
  0xad   : > { %1033 = shalt.err (!%p1030_p10)
}
  0xae   : > { %s1034_s0 = scalar_lea.hbm %s1581_s19, 256  ;;  %s1038_s17 = scalar_lea.hbm %s1791_s4, 1536 }
  0xaf   : > { %p1035_p5 = scmp.ne.s32.totalorder %s1581_s19, %s1034_s0  ;;  %p1039_p0 = scmp.lt.u32.totalorder %s1581_s19, %s1791_s4 }
  0xb0   : > { %p1040_p6 = scmp.lt.u32.totalorder %s1038_s17, %s1034_s0  ;;  %p1042_p7 = scmp.lt.u32.totalorder %s1034_s0, %s1581_s19 }
  0xb1   : > { %p1036_p13 = pnand %p1035_p5, %p1792_p8 }
  0xb2   : > { %p1041_p3 = por %p1040_p6, %p1039_p0 }
  0xb3   : > { %p1037_p12 = pneg %p1036_p13 }
  0xb4   : > { %p1043_p1 = por %p1042_p7, %p1041_p3 }
  0xb6   : > { %p1044_p2 = pnand %p1043_p1, %p1037_p12 }
  0xb8   : > { %1047 = shalt.err (!%p1044_p2)
}
  0xb9   : > { %s1222_s27 = smov 64   ;;  %s1793_s11 = sld [smem:[#allocation23_spill]]  ;;  %492 = vst [vmem:[%s1498_s12] sm:$0xff] %v475_v60  ;;  %493 = vst [vmem:[%s1498_s12 + $0x8] sm:$0xff] %v476_v61 }
  0xba   : > { %s1223_s9 = smov 128   ;;  %s1224_s6 = smov 4  }
  0xbb   : > { %828 = dma.vmem_to_hbm [thread:$0]  (%p1792_p8), %s1583_s16, 256, %s1581_s19, %s497_s10, %s1222_s27, %s1223_s9, %s1224_s6  }
  0xbc   : > { %s1794_s18 = sshll.u32 %s1198_s28, 7  ;;  %s1795_s14 = sld [smem:[#allocation32_spill]] }
  0xbd   : > { %s1796_s3 = sshll.u32 %s1500_s1, 4  ;;  %s1797_s4 = sand.u32 1, %s1320_s8   ;;  %s1631_s3 = int_to_ptr.vmem [resolvable:$true] %s1796_s3 }
  0xbe   : > { %s1636_s7 = scalar_lea.sflag [#allocation11], %s1797_s4  ;;  %s1048_s30 = scalar_lea.vmem %s1590_s24, 256 }
  0xbf   : > { %p1049_p9 = scmp.ne.s32.totalorder %s1590_s24, %s1048_s30  ;;  %p1798_p4 = scmp.ne.s32.totalorder %s1793_s11, 0 }
  0xc0   : > { %s1225_s13 = smov [#allocation10]  }
  0xc1   : > { %p1050_p11 = pnand %p1049_p9, %p1798_p4  ;;  %s1052_s21 = sshll.u32 %s1225_s13, 4  ;;  %s1053_s21 = int_to_ptr.vmem [resolvable:$false] %s1052_s21 }
  0xc2   : > { %s1627_s2 = scalar_lea.hbm %s1795_s14, %s1794_s18  ;;  %s1054_s28 = scalar_lea.vmem %s1053_s21, 512 }
  0xc3   : > { %p1051_p10 = pneg %p1050_p11  ;;  %p1055_p8 = scmp.lt.s32.totalorder %s1590_s24, %s1053_s21 }
  0xc4   : > { %p1056_p5 = scmp.lt.s32.totalorder %s1054_s28, %s1048_s30 }
  0xc6   : > { %p1057_p13 = por %p1056_p5, %p1055_p8 }
  0xc8   : > { %p1058_p12 = pnand %p1057_p13, %p1051_p10 }
  0xca   : > { %1061 = shalt.err (!%p1058_p12)
}
  0xcb   : > { %s1062_s4 = scalar_lea.hbm %s1570_s15, 256  ;;  %s1066_s1 = scalar_lea.hbm %s1734_s5, 512 }
  0xcc   : > { %p1063_p0 = scmp.ne.s32.totalorder %s1570_s15, %s1062_s4  ;;  %p1067_p7 = scmp.lt.u32.totalorder %s1570_s15, %s1734_s5 }
  0xcd   : > { %p1068_p1 = scmp.lt.u32.totalorder %s1066_s1, %s1062_s4  ;;  %p1070_p9 = scmp.lt.u32.totalorder %s1062_s4, %s1570_s15 }
  0xce   : > { %p1064_p6 = pnand %p1063_p0, %p1798_p4 }
  0xcf   : > { %p1069_p2 = por %p1068_p1, %p1067_p7 }
  0xd0   : > { %p1065_p3 = pneg %p1064_p6 }
  0xd1   : > { %p1071_p11 = por %p1070_p9, %p1069_p2 }
  0xd3   : > { %p1072_p10 = pnand %p1071_p11, %p1065_p3 }
  0xd5   : > { %1075 = shalt.err (!%p1072_p10)
}
  0xd6   : > { %s1226_s30 = smov 256   ;;  %s1227_s10 = smov 8  }
  0xd7   : > { %829 = dma.vmem_to_hbm [thread:$0]  (%p1798_p4), %s1590_s24, 256, %s1570_s15, %s1636_s7, %s1223_s9, %s1226_s30, %s1227_s10  }
  0xd8   : > { %s1076_s27 = scalar_lea.vmem %s1631_s3, 256  ;;  %s1228_s6 = smov [#allocation12]  }
  0xd9   : > { %p1077_p8 = scmp.ne.s32.totalorder %s1631_s3, %s1076_s27  ;;  %s1080_s18 = sshll.u32 %s1228_s6, 4  ;;  %s1081_s18 = int_to_ptr.vmem [resolvable:$false] %s1080_s18 }
  0xda   : > { %s1082_s0 = scalar_lea.vmem %s1081_s18, 512  ;;  %p1083_p12 = scmp.lt.s32.totalorder %s1631_s3, %s1081_s18 }
  0xdb   : > { %p1078_p5 = pnand %p1077_p8, %p1798_p4  ;;  %p1084_p0 = scmp.lt.s32.totalorder %s1082_s0, %s1076_s27 }
  0xdd   : > { %p1079_p13 = pneg %p1078_p5  ;;  %p1085_p6 = por %p1084_p0, %p1083_p12 }
  0xdf   : > { %p1086_p3 = pnand %p1085_p6, %p1079_p13 }
  0xe1   : > { %1089 = shalt.err (!%p1086_p3)
}
  0xe2   : > { %s1090_s15 = scalar_lea.hbm %s1627_s2, 256  ;;  %s1094_s13 = scalar_lea.hbm %s1795_s14, 512 }
  0xe3   : > { %p1091_p7 = scmp.ne.s32.totalorder %s1627_s2, %s1090_s15  ;;  %p1095_p9 = scmp.lt.u32.totalorder %s1627_s2, %s1795_s14 }
  0xe4   : > { %p1096_p11 = scmp.lt.u32.totalorder %s1094_s13, %s1090_s15  ;;  %p1098_p8 = scmp.lt.u32.totalorder %s1090_s15, %s1627_s2 }
  0xe5   : > { %p1092_p1 = pnand %p1091_p7, %p1798_p4 }
  0xe6   : > { %p1097_p10 = por %p1096_p11, %p1095_p9 }
  0xe7   : > { %p1093_p2 = pneg %p1092_p1 }
  0xe8   : > { %p1099_p5 = por %p1098_p8, %p1097_p10 }
  0xea   : > { %p1100_p13 = pnand %p1099_p5, %p1093_p2 }
  0xec   : > { %1103 = shalt.err (!%p1100_p13)
}
  0xed   : > { %830 = dma.vmem_to_hbm [thread:$0]  (%p1798_p4), %s1631_s3, 256, %s1627_s2, %s1636_s7, %s1223_s9, %s1226_s30, %s1227_s10  }
  0xee PF: > { %s1799_s4 = sld [smem:[#allocation21_spill]]  ;;  %s1800_s8 = sld [smem:[#allocation18_spill]] }
  0xef   : > { %s1801_s12 = sld [smem:[#allocation22_spill]] }
  0xf4   : > { %p860_p12 = scmp.ge.s32.totalorder %s1799_s4, 2  ;;  %s576_s1 = sand.u32 1, %s1800_s8  }
  0xf5   : > { %p1802_p0 = scmp.ne.s32.totalorder %s1801_s12, 0  ;;  %s577_s16 = scalar_lea.sflag [#allocation4], %s576_s1 }
  0xf7   : > { %p846_p6 = pnand %p860_p12, %p1802_p0 }
  0xf9   : > { %1161 = dma.done.wait (!%p846_p6), %s577_s16, 256  }
  0xfa   : > { %1163 = vsyncadd (!%p846_p6), %s577_s16, 4294967040  ;;  %s1803_s11 = sadd.s32 4294967294, %s1799_s4   ;;  %s1804_s19 = sld [smem:[#allocation24_spill]] }
  0xfb   : > { %s585_s27 = sand.u32 1, %s1803_s11  }
  0xfc   : > { %s586_s6 = scalar_lea.sflag [#allocation11], %s585_s27 }
 0x100   : > { %p1805_p3 = scmp.ne.s32.totalorder %s1804_s19, 0 }
 0x102   : > { %p849_p7 = pnand %p860_p12, %p1805_p3 }
 0x104   : > { %1165 = dma.done.wait (!%p849_p7), %s586_s6, 512  }
 0x105   : > { %1167 = vsyncadd (!%p849_p7), %s586_s6, 4294966784  ;;  %s28_s7 = sadd.s32 1, %s1799_s4   ;;  %s1806_s27 = sld [smem:[#allocation19_spill]] }
 0x106   : > { %p25_p4 = scmp.ge.s32.totalorder %s28_s7, 8   ;;  %s1807_s28 = sld [smem:[#allocation20_spill]] }
 0x107   : > { %s1808_s2 = sld [smem:[#allocation25_spill]]  ;;  %s1809_s30 = sld [smem:[#allocation26_spill]] }
 0x108   : > { %s1810_s21 = smov %s1174_s22  ;;  %s1811_s22 = smov %s1178_s23 }
 0x109   : > { %s1812_s23 = smov %s1430_s29  ;;  %s1813_s24 = smov %s1186_s25 }
 0x10a   : > { %s1814_s25 = smov %s1190_s26  ;;  %s1815_s26 = smov %s1435_s20 }
 0x10b   :  { %27 = sbr.rel (!%p25_p4) target bundleno = 20 (0x14), region = 132 }
 0x10d   : > { %s1816_s29 = smov %s1808_s2 }
 0x112   :  { %600 = vsyncpa [#allocation3], 1 }
 0x113   :  { %602 = vsyncpa [#allocation3 + $0x1], 1 }
 0x114   :  { %603 = vsyncpa [#allocation4], 1 }
 0x115   :  { %605 = vsyncpa [#allocation4 + $0x1], 1 }
 0x116   :  { %606 = vsyncpa [#allocation11], 1 }
 0x117   :  { %608 = vsyncpa [#allocation11 + $0x1], 1 }
 0x118   :  { %609 = vsyncpa [#allocation5], 1 }
 0x119   :  { %611 = vsyncpa [#allocation5 + $0x1], 1 }
 0x11a   :  { %612 = vsyncpa [#allocation6], 1 }
 0x11b   :  { %614 = vsyncpa [#allocation6 + $0x1], 1 }

</bundles_post_ra>
